<compile_context>
chip_gen: v5e
topology: v5e:2x2
jax: 0.10.0
libtpu: 0.0.40
codegen_flags: <defaults>
</compile_context>

<pallas_src>
import math

import jax
import jax.numpy as jnp
from jax.experimental import pallas as pl
from jax.experimental.pallas import tpu as pltpu


def _film_kernel(x_ref, g_ref, b_ref, o_ref):
    # x_ref: (tr, W); g_ref/b_ref: (1, W) — broadcast over rows on the VPU.
    x = x_ref[...].astype(jnp.float32)
    g = g_ref[...].astype(jnp.float32)
    b = b_ref[...].astype(jnp.float32)
    o_ref[...] = (g * x + b).astype(o_ref.dtype)


def _choose_lane_width(total, C, max_w=4096):
    """Lane width: multiple of lcm(C, 128); grown (up to max_w) while it
    still divides the total element count so the reshape stays free."""
    base = math.lcm(C, 128)
    if base >= max_w:
        return base
    if total % base == 0:
        W = base
        while W * 2 <= max_w and total % (W * 2) == 0:
            W *= 2
        return W
    # Padding unavoidable for this C/total; aim for ~1024-wide lanes.
    return base * max(1, -(-1024 // base))


def btf_broadcasted_film(x, gamma, beta, *, target_block_bytes=4 << 20):
    """out = gamma * x + beta, gamma/beta broadcast over last axis of 4-D x."""
    B, T, F, C = x.shape
    assert gamma.shape == (C,) and beta.shape == (C,)

    # PyTorch type promotion: result dtype is the promoted dtype.
    out_dtype = jnp.result_type(x.dtype, gamma.dtype, beta.dtype)
    total = B * T * F * C

    # --- lane-dense repack -------------------------------------------------
    W = _choose_lane_width(total, C)
    padded_total = -(-total // W) * W

    flat = x.reshape(-1)
    if padded_total != total:
        flat = jnp.pad(flat, (0, padded_total - total))
    rows = padded_total // W
    x2 = flat.reshape(rows, W)

    reps = W // C  # W is a multiple of C by construction
    g2 = jnp.tile(gamma.astype(jnp.float32), reps).reshape(1, W)
    b2 = jnp.tile(beta.astype(jnp.float32), reps).reshape(1, W)

    # --- row-tile selection (budget ~4 MiB per step for x + out) -----------
    in_item = x.dtype.itemsize
    out_item = jnp.dtype(out_dtype).itemsize
    bytes_per_row = W * (in_item + out_item)
    tr = max(8, target_block_bytes // bytes_per_row)
    tr = (tr // 8) * 8
    if rows < 8:
        tr = rows                      # block dim == full array dim: allowed
    else:
        tr = min(tr, (rows // 8) * 8)  # keep sublane-aligned, <= rows
    grid = (pl.cdiv(rows, tr),)        # boundary blocks handled by Pallas

    out2 = pl.pallas_call(
        _film_kernel,
        out_shape=jax.ShapeDtypeStruct((rows, W), out_dtype),
        grid_spec=pltpu.PrefetchScalarGridSpec(
            num_scalar_prefetch=0,
            grid=grid,
            in_specs=[
                pl.BlockSpec((tr, W), lambda i: (i, 0)),   # x tile (streamed)
                pl.BlockSpec((1, W), lambda i: (0, 0)),    # gamma (resident)
                pl.BlockSpec((1, W), lambda i: (0, 0)),    # beta  (resident)
            ],
            out_specs=pl.BlockSpec((tr, W), lambda i: (i, 0)),
        ),
        compiler_params=pltpu.CompilerParams(
            dimension_semantics=("parallel",),  # megacore / 2-TC sharding
        ),
    )(x2, g2, b2)

    out_flat = out2.reshape(-1)
    if padded_total != total:
        out_flat = out_flat[:total]
    return out_flat.reshape(B, T, F, C)


if __name__ == "__main__":
    key = jax.random.PRNGKey(0)
    kx, kg, kb = jax.random.split(key, 3)

    B, T, F, C = 2, 8, 16, 32
    x = jax.random.normal(kx, (B, T, F, C), dtype=jnp.float32)
    gamma = jax.random.normal(kg, (C,), dtype=jnp.float32)
    beta = jax.random.normal(kb, (C,), dtype=jnp.float32)

    out = btf_broadcasted_film(x, gamma, beta)
    out = jax.block_until_ready(out)

    # Reference check (plain JAX, same broadcasting as the PyTorch module).
    ref = gamma[None, None, None, :] * x + beta[None, None, None, :]
    assert out.shape == x.shape
    assert out.dtype == ref.dtype
    assert jnp.allclose(out, ref, atol=1e-6, rtol=1e-6)

    print("KERNEL_OK")
</pallas_src>

<mosaic_0001>
module attributes {stable_mosaic.version = 11 : i64} {
  func.func @_film_kernel(%arg0: i32, %arg1: memref<2x4096xf32, #tpu.memory_space<vmem>>, %arg2: memref<1x4096xf32, #tpu.memory_space<vmem>>, %arg3: memref<1x4096xf32, #tpu.memory_space<vmem>>, %arg4: memref<2x4096xf32, #tpu.memory_space<vmem>>) attributes {dimension_semantics = [#tpu.dimension_semantics<parallel>], iteration_bounds = array<i64: 1>, scalar_prefetch = 0 : i64, scratch_operands = 0 : i64, tpu.core_type = #tpu.core_type<tc>, window_params = [{transform_indices = @transform_0, window_bounds = array<i64: 2, 4096>}, {pipeline_mode = #tpu.pipeline_mode<synchronous>, transform_indices = @transform_1, window_bounds = array<i64: 1, 4096>}, {pipeline_mode = #tpu.pipeline_mode<synchronous>, transform_indices = @transform_2, window_bounds = array<i64: 1, 4096>}, {transform_indices = @transform_3, window_bounds = array<i64: 2, 4096>}]} {
    %c0 = arith.constant 0 : index
    %c0_0 = arith.constant 0 : index
    %0 = vector.load %arg1[%c0, %c0_0] : memref<2x4096xf32, #tpu.memory_space<vmem>>, vector<2x4096xf32>
    %c0_1 = arith.constant 0 : index
    %c0_2 = arith.constant 0 : index
    %1 = vector.load %arg2[%c0_1, %c0_2] : memref<1x4096xf32, #tpu.memory_space<vmem>>, vector<1x4096xf32>
    %c0_3 = arith.constant 0 : index
    %c0_4 = arith.constant 0 : index
    %2 = vector.load %arg3[%c0_3, %c0_4] : memref<1x4096xf32, #tpu.memory_space<vmem>>, vector<1x4096xf32>
    %3 = vector.broadcast %1 : vector<1x4096xf32> to vector<2x4096xf32>
    %4 = arith.mulf %3, %0 : vector<2x4096xf32>
    %5 = vector.broadcast %2 : vector<1x4096xf32> to vector<2x4096xf32>
    %6 = arith.addf %4, %5 : vector<2x4096xf32>
    %c0_5 = arith.constant 0 : index
    %c0_6 = arith.constant 0 : index
    %7 = vector.load %arg4[%c0_5, %c0_6] : memref<2x4096xf32, #tpu.memory_space<vmem>>, vector<2x4096xf32>
    tpu.vector_store %arg4[%c0_5, %c0_6], %6 {strides = array<i32>} : memref<2x4096xf32, #tpu.memory_space<vmem>>, vector<2x4096xf32>,
    return
  }
  func.func @transform_0(%arg0: i32) -> (i32, i32) {
    %c0_i32 = arith.constant 0 : i32
    %c0_i32_0 = arith.constant 0 : i32
    return %arg0, %c0_i32 : i32, i32
  }
  func.func @transform_1(%arg0: i32) -> (i32, i32) {
    %c0_i32 = arith.constant 0 : i32
    %c0_i32_0 = arith.constant 0 : i32
    %c0_i32_1 = arith.constant 0 : i32
    return %c0_i32, %c0_i32_0 : i32, i32
  }
  func.func @transform_2(%arg0: i32) -> (i32, i32) {
    %c0_i32 = arith.constant 0 : i32
    %c0_i32_0 = arith.constant 0 : i32
    %c0_i32_1 = arith.constant 0 : i32
    return %c0_i32, %c0_i32_0 : i32, i32
  }
  func.func @transform_3(%arg0: i32) -> (i32, i32) {
    %c0_i32 = arith.constant 0 : i32
    %c0_i32_0 = arith.constant 0 : i32
    return %arg0, %c0_i32 : i32, i32
  }
}

</mosaic_0001>

<bundles_post_ra>
// kernel: tpu_custom_call.1
= control target key start
LH: loop header
LB: loop body
LE: loop exit
PB: predicated region body
PF: predicated region fallthrough
CT: control target
= control target key end

     0   :  { %8 = vsyncpa [#allocation3], 0  ;;  %s666_s0 = inlined_call_operand.hbm [shape: f32[2,4096], index: 0, kind: input, shape index: {}]   ;;  %s667_s1 = inlined_call_operand.hbm [shape: f32[1,4096], index: 1, kind: input, shape index: {}]   ;;  %s668_s2 = inlined_call_operand.hbm [shape: f32[1,4096], index: 2, kind: input, shape index: {}]   ;;  %s669_s3 = inlined_call_operand.hbm [shape: f32[2,4096], index: 3, kind: output, shape index: {}]  }
   0x1   :  { %9 = vsyncpa [#allocation6], 0  ;;  %s27_s14 = sshll.u32 %s667_s1, 4  ;;  %s28_s14 = int_to_ptr.hbm [resolvable:$true] %s27_s14 }
   0x2   :  { %10 = vsyncpa [#allocation4], 0  ;;  %s576_s15 = smov [#allocation5]   ;;  %s16_s19 = sshll.u32 %s666_s0, 4  ;;  %s17_s19 = int_to_ptr.hbm [resolvable:$true] %s16_s19 }
   0x3   :  { %s29_s16 = sshll.u32 %s576_s15, 4  ;;  %s577_s20 = smov [#allocation2]   ;;  %s30_s16 = int_to_ptr.vmem [resolvable:$true] %s29_s16 }
   0x4   :  { %32 = dma.hbm_to_vmem [thread:$0]  %s28_s14, 512, %s30_s16, [#allocation6]  }
   0x5   :  { %s18_s21 = sshll.u32 %s577_s20, 4  ;;  %s38_s24 = sshll.u32 %s668_s2, 4  ;;  %s19_s21 = int_to_ptr.vmem [resolvable:$true] %s18_s21  ;;  %s39_s24 = int_to_ptr.hbm [resolvable:$true] %s38_s24 }
   0x6   :  { %21 = dma.hbm_to_vmem [thread:$0]  %s17_s19, 1024, %s19_s21, [#allocation3]  }
   0x7   :  { %s578_s1 = smov [#allocation7]  }
   0x8   :  { %s40_s25 = sshll.u32 %s578_s1, 4  ;;  %s41_s25 = int_to_ptr.vmem [resolvable:$true] %s40_s25 }
   0x9   :  { %43 = dma.hbm_to_vmem [thread:$0]  %s39_s24, 512, %s41_s25, [#allocation6]  }
   0xa   :  { %570 = dma.done.wait [#allocation3], 1024  }
   0xb   :  { %571 = vsyncadd [#allocation3], 4294966272 }
   0xc   :  { %572 = dma.done.wait [#allocation6], 1024  }
   0xd   :  { %573 = vsyncadd [#allocation6], 4294966272  ;;  %v56_v0 = vld [vmem:[#allocation2] sm:$0xff]  ;;  %v57_v1 = vld [vmem:[#allocation2 + $0x8] sm:$0xff]  ;;  %vm409_vm0 = vcmask 1041408   ;;  %vm411_vm1 = vcmask 1045508  }
   0xe   :  { %148 = vst [vmem:[#allocation1] ss:$4 sm:$0xff] %v56_v0  ;;  %v64_v2 = vld [vmem:[#allocation5] sm:$0xff]  ;;  %v609_v11 = vld [vmem:[#allocation5 + $0x8] sm:$0xff]  ;;  %v58_v20 = vld [vmem:[#allocation2 + $0x10] sm:$0xff]  ;;  %vm413_vm2 = vcmask 1043456  }
   0xf   :  { %150 = vst [vmem:[#allocation1 + $0x20] ss:$4 sm:$0xff] %v57_v1  ;;  %v68_v3 = vld [vmem:[#allocation7] sm:$0xff]  ;;  %v76_v4 = vperm.slane %v64_v2, 0  ;;  %v77_v5 = vperm.slane %v64_v2, 1  ;;  %v78_v6 = vperm.slane %v64_v2, 2 }
  0x10   :  { %v79_v7 = vperm.slane %v64_v2, 3  ;;  %v257_v8 = vperm.slane %v68_v3, 0  ;;  %v258_v9 = vperm.slane %v68_v3, 1  ;;  %v259_v10 = vperm.slane %v68_v3, 2  ;;  %v59_v27 = vld [vmem:[#allocation2 + $0x18] sm:$0xff]  ;;  %v614_v28 = vld [vmem:[#allocation7 + $0x8] sm:$0xff] }
  0x11   :  { %v260_v12 = vperm.slane %v68_v3, 3  ;;  %v80_v13 = vperm.slane %v64_v2, 4  ;;  %v81_v14 = vperm.slane %v64_v2, 5  ;;  %v82_v15 = vperm.slane %v64_v2, 6  ;;  %v60_v58 = vld [vmem:[#allocation2 + $0x20] sm:$0xff]  ;;  %s579_s0 = smov [#allocation8]  }
  0x12   :  { %v83_v16 = vperm.slane %v64_v2, 7  ;;  %v261_v17 = vperm.slane %v68_v3, 4  ;;  %v262_v18 = vperm.slane %v68_v3, 5  ;;  %v263_v19 = vperm.slane %v68_v3, 6  ;;  %s457_s2 = sshll.u32 %s579_s0, 4  ;;  %s459_s28 = sshll.u32 %s669_s3, 4  ;;  %s458_s2 = int_to_ptr.vmem [resolvable:$true] %s457_s2  ;;  %s460_s28 = int_to_ptr.hbm [resolvable:$true] %s459_s28 }
  0x13   :  { %v264_v21 = vperm.slane %v68_v3, 7  ;;  %v84_v22 = vperm.slane %v609_v11, 0  ;;  %v85_v23 = vperm.slane %v609_v11, 1  ;;  %v86_v24 = vperm.slane %v609_v11, 2 }
  0x14   :  { %v87_v36 = vperm.slane %v609_v11, 3  ;;  %v265_v49 = vperm.slane %v614_v28, 0  ;;  %v266_v56 = vperm.slane %v614_v28, 1  ;;  %v267_v57 = vperm.slane %v614_v28, 2 }
  0x15   :  { %v151_v25 = vld.sshfl [vmem:[#allocation1] sm:$0xff pattern:$0x73625140]  ;;  %v152_v26 = vld.sshfl [vmem:[#allocation1 + $0x8] sm:$0xff pattern:$0x73625140] }
  0x16   :  { %v153_v29 = vld.sshfl [vmem:[#allocation1 + $0x10] sm:$0xff pattern:$0x73625140]  ;;  %v154_v30 = vld.sshfl [vmem:[#allocation1 + $0x18] sm:$0xff pattern:$0x73625140]  ;;  %v221_v31 = vmul.f32 %v151_v25, %v76_v4  ;;  %v222_v32 = vmul.f32 %v152_v26, %v77_v5 }
  0x17   :  { %159 = vst [vmem:[#allocation1] ss:$4 sm:$0xff] %v58_v20  ;;  %v155_v33 = vld.sshfl [vmem:[#allocation1 + $0x20] sm:$0xff pattern:$0x73625140]  ;;  %v223_v34 = vmul.f32 %v153_v29, %v78_v6  ;;  %v224_v35 = vmul.f32 %v154_v30, %v79_v7  ;;  %v268_v61 = vperm.slane %v614_v28, 3 }
  0x18   :  { %v156_v37 = vld.sshfl [vmem:[#allocation1 + $0x28] sm:$0xff pattern:$0x73625140]  ;;  %v157_v38 = vld.sshfl [vmem:[#allocation1 + $0x30] sm:$0xff pattern:$0x73625140]  ;;  %v322_v39 = vadd.f32 %v258_v9, %v222_v32  ;;  %v225_v40 = vmul.f32 %v155_v33, %v80_v13  ;;  %v321_v46 = vadd.f32 %v257_v8, %v221_v31 }
  0x19   :  { %v158_v41 = vld.sshfl [vmem:[#allocation1 + $0x38] sm:$0xff pattern:$0x73625140]  ;;  %v323_v42 = vadd.f32 %v259_v10, %v223_v34  ;;  %v324_v43 = vadd.f32 %v260_v12, %v224_v35  ;;  %v226_v44 = vmul.f32 %v156_v37, %v81_v14  ;;  %v227_v45 = vmul.f32 %v157_v38, %v82_v15  ;;  %v61_v7 = vld [vmem:[#allocation2 + $0x28] sm:$0xff] }
  0x1a   :  { %160 = vst [vmem:[#allocation1 + $0x20] ss:$4 sm:$0xff] %v59_v27  ;;  %v385_v47 = vrot.slane %v322_v39, 6  ;;  %v228_v48 = vmul.f32 %v158_v41, %v83_v16  ;;  %v325_v54 = vadd.f32 %v261_v17, %v225_v40  ;;  %v88_v62 = vperm.slane %v609_v11, 4  ;;  %v62_v37 = vld [vmem:[#allocation2 + $0x30] sm:$0xff] }
  0x1b   :  { %v386_v50 = vrot.slane %v323_v42, 4  ;;  %v387_v51 = vrot.slane %v324_v43, 2  ;;  %v326_v52 = vadd.f32 %v262_v18, %v226_v44  ;;  %v327_v53 = vadd.f32 %v263_v19, %v227_v45  ;;  %v66_v40 = vld [vmem:[#allocation5 + $0x10] sm:$0xff]  ;;  %v63_v42 = vld [vmem:[#allocation2 + $0x38] sm:$0xff] }
  0x1c   :  { %v328_v55 = vadd.f32 %v264_v21, %v228_v48  ;;  %v410_v1 = vsel %vm409_vm0, %v321_v46, %v385_v47  ;;  %v89_v12 = vperm.slane %v609_v11, 5  ;;  %v90_v27 = vperm.slane %v609_v11, 6  ;;  %v637_v46 = vld [vmem:[#allocation7 + $0x10] sm:$0xff] }
  0x1d   :  { %v388_v59 = vrot.slane %v326_v52, 6  ;;  %v389_v60 = vrot.slane %v327_v53, 4  ;;  %v412_v2 = vsel %vm411_vm1, %v386_v50, %v387_v51  ;;  %v91_v29 = vperm.slane %v609_v11, 7 }
  0x1e   :  { %v161_v63 = vld.sshfl [vmem:[#allocation1] sm:$0xff pattern:$0x73625140]  ;;  %v162_v0 = vld.sshfl [vmem:[#allocation1 + $0x8] sm:$0xff pattern:$0x73625140]  ;;  %v414_v15 = vsel %vm413_vm2, %v410_v1, %v412_v2 }
  0x1f   :  { %v163_v3 = vld.sshfl [vmem:[#allocation1 + $0x10] sm:$0xff pattern:$0x73625140]  ;;  %v164_v4 = vld.sshfl [vmem:[#allocation1 + $0x18] sm:$0xff pattern:$0x73625140]  ;;  %v415_v5 = vsel %vm409_vm0, %v325_v54, %v388_v59  ;;  %v230_v6 = vmul.f32 %v162_v0, %v85_v23  ;;  %v229_v16 = vmul.f32 %v161_v63, %v84_v22 }
  0x20   :  { %169 = vst [vmem:[#allocation1] ss:$4 sm:$0xff] %v60_v58  ;;  %v390_v8 = vrot.slane %v328_v55, 2  ;;  %v231_v9 = vmul.f32 %v163_v3, %v86_v24  ;;  %v232_v10 = vmul.f32 %v164_v4, %v87_v36  ;;  %v269_v32 = vperm.slane %v614_v28, 4 }
  0x21   :  { %v165_v13 = vld.sshfl [vmem:[#allocation1 + $0x20] sm:$0xff pattern:$0x73625140]  ;;  %v166_v14 = vld.sshfl [vmem:[#allocation1 + $0x28] sm:$0xff pattern:$0x73625140]  ;;  %v330_v17 = vadd.f32 %v266_v56, %v230_v6  ;;  %v329_v33 = vadd.f32 %v265_v49, %v229_v16 }
  0x22   :  { %v167_v18 = vld.sshfl [vmem:[#allocation1 + $0x30] sm:$0xff pattern:$0x73625140]  ;;  %v168_v19 = vld.sshfl [vmem:[#allocation1 + $0x38] sm:$0xff pattern:$0x73625140]  ;;  %v416_v20 = vsel %vm411_vm1, %v389_v60, %v390_v8  ;;  %v331_v21 = vadd.f32 %v267_v57, %v231_v9  ;;  %v332_v25 = vadd.f32 %v268_v61, %v232_v10  ;;  %v233_v23 = vmul.f32 %v165_v13, %v88_v62 }
  0x23   :  { %170 = vst [vmem:[#allocation1 + $0x20] ss:$4 sm:$0xff] %v61_v7  ;;  %v417_v26 = vsel %vm413_vm2, %v415_v5, %v416_v20  ;;  %v391_v24 = vrot.slane %v330_v17, 6  ;;  %v234_v22 = vmul.f32 %v166_v14, %v89_v12  ;;  %v235_v34 = vmul.f32 %v167_v18, %v90_v27 }
  0x24   :  { %444 = vst [vmem:[#allocation8] sm:$0xff] %v414_v15  ;;  %v392_v30 = vrot.slane %v331_v21, 4  ;;  %v393_v31 = vrot.slane %v332_v25, 2  ;;  %v236_v35 = vmul.f32 %v168_v19, %v91_v29  ;;  %v270_v36 = vperm.slane %v614_v28, 5  ;;  %v67_v21 = vld [vmem:[#allocation5 + $0x18] sm:$0xff] }
  0x25   :  { %445 = vst [vmem:[#allocation8 + $0x8] sm:$0xff] %v417_v26  ;;  %v271_v38 = vperm.slane %v614_v28, 6  ;;  %v272_v39 = vperm.slane %v614_v28, 7  ;;  %v418_v43 = vsel %vm409_vm0, %v329_v33, %v391_v24  ;;  %v333_v49 = vadd.f32 %v269_v32, %v233_v23 }
  0x26   :  { %v419_v44 = vsel %vm411_vm1, %v392_v30, %v393_v31  ;;  %v334_v45 = vadd.f32 %v270_v36, %v234_v22  ;;  %v92_v53 = vperm.slane %v66_v40, 0  ;;  %v93_v28 = vperm.slane %v66_v40, 1 }
  0x27   :  { %v171_v41 = vld.sshfl [vmem:[#allocation1] sm:$0xff pattern:$0x73625140]  ;;  %v172_v11 = vld.sshfl [vmem:[#allocation1 + $0x8] sm:$0xff pattern:$0x73625140]  ;;  %v335_v50 = vadd.f32 %v271_v38, %v235_v34  ;;  %v336_v51 = vadd.f32 %v272_v39, %v236_v35  ;;  %v420_v57 = vsel %vm413_vm2, %v418_v43, %v419_v44 }
  0x28   :  { %v173_v47 = vld.sshfl [vmem:[#allocation1 + $0x10] sm:$0xff pattern:$0x73625140]  ;;  %v174_v48 = vld.sshfl [vmem:[#allocation1 + $0x18] sm:$0xff pattern:$0x73625140]  ;;  %v237_v61 = vmul.f32 %v171_v41, %v92_v53  ;;  %v238_v62 = vmul.f32 %v172_v11, %v93_v28 }
  0x29   :  { %179 = vst [vmem:[#allocation1] ss:$4 sm:$0xff] %v62_v37  ;;  %v394_v52 = vrot.slane %v334_v45, 6  ;;  %v94_v54 = vperm.slane %v66_v40, 2  ;;  %v395_v0 = vrot.slane %v335_v50, 4  ;;  %v396_v1 = vrot.slane %v336_v51, 2 }
  0x2a   :  { %v175_v55 = vld.sshfl [vmem:[#allocation1 + $0x20] sm:$0xff pattern:$0x73625140]  ;;  %v176_v56 = vld.sshfl [vmem:[#allocation1 + $0x28] sm:$0xff pattern:$0x73625140] }
  0x2b   :  { %v177_v58 = vld.sshfl [vmem:[#allocation1 + $0x30] sm:$0xff pattern:$0x73625140]  ;;  %v178_v59 = vld.sshfl [vmem:[#allocation1 + $0x38] sm:$0xff pattern:$0x73625140]  ;;  %v421_v60 = vsel %vm409_vm0, %v333_v49, %v394_v52  ;;  %v239_v63 = vmul.f32 %v173_v47, %v94_v54  ;;  %v422_v8 = vsel %vm411_vm1, %v395_v0, %v396_v1 }
  0x2c   :  { %180 = vst [vmem:[#allocation1 + $0x20] ss:$4 sm:$0xff] %v63_v42  ;;  %v95_v2 = vperm.slane %v66_v40, 3  ;;  %v273_v3 = vperm.slane %v637_v46, 0  ;;  %v274_v4 = vperm.slane %v637_v46, 1  ;;  %v275_v5 = vperm.slane %v637_v46, 2 }
  0x2d   :  { %446 = vst [vmem:[#allocation8 + $0x10] sm:$0xff] %v420_v57  ;;  %v276_v6 = vperm.slane %v637_v46, 3  ;;  %v96_v7 = vperm.slane %v66_v40, 4  ;;  %v97_v12 = vperm.slane %v66_v40, 5  ;;  %v423_v13 = vsel %vm413_vm2, %v421_v60, %v422_v8  ;;  %v71_v41 = vld [vmem:[#allocation7 + $0x18] sm:$0xff] }
  0x2e   :  { %v240_v9 = vmul.f32 %v174_v48, %v95_v2  ;;  %v337_v10 = vadd.f32 %v273_v3, %v237_v61  ;;  %v338_v14 = vadd.f32 %v274_v4, %v238_v62  ;;  %v339_v15 = vadd.f32 %v275_v5, %v239_v63  ;;  %447 = vst [vmem:[#allocation8 + $0x18] sm:$0xff] %v423_v13 }
  0x2f   :  { %v98_v16 = vperm.slane %v66_v40, 6  ;;  %v99_v18 = vperm.slane %v66_v40, 7  ;;  %v241_v19 = vmul.f32 %v175_v55, %v96_v7  ;;  %v242_v20 = vmul.f32 %v176_v56, %v97_v12 }
  0x30   :  { %v340_v17 = vadd.f32 %v276_v6, %v240_v9  ;;  %v397_v25 = vrot.slane %v338_v14, 6  ;;  %v398_v23 = vrot.slane %v339_v15, 4  ;;  %v277_v24 = vperm.slane %v637_v46, 4  ;;  %v181_v27 = vld.sshfl [vmem:[#allocation1] sm:$0xff pattern:$0x73625140] }
  0x31   :  { %v243_v26 = vmul.f32 %v177_v58, %v98_v16  ;;  %v244_v30 = vmul.f32 %v178_v59, %v99_v18  ;;  %v278_v31 = vperm.slane %v637_v46, 5  ;;  %v279_v22 = vperm.slane %v637_v46, 6  ;;  %v182_v32 = vld.sshfl [vmem:[#allocation1 + $0x8] sm:$0xff pattern:$0x73625140] }
  0x32   :  { %v399_v29 = vrot.slane %v340_v17, 2  ;;  %v424_v33 = vsel %vm409_vm0, %v337_v10, %v397_v25  ;;  %v280_v34 = vperm.slane %v637_v46, 7  ;;  %v341_v35 = vadd.f32 %v277_v24, %v241_v19  ;;  %v183_v37 = vld.sshfl [vmem:[#allocation1 + $0x10] sm:$0xff pattern:$0x73625140] }
  0x33   :  { %v100_v36 = vperm.slane %v67_v21, 0  ;;  %v342_v39 = vadd.f32 %v278_v31, %v242_v20  ;;  %v343_v40 = vadd.f32 %v279_v22, %v243_v26  ;;  %v101_v11 = vperm.slane %v67_v21, 1  ;;  %v184_v42 = vld.sshfl [vmem:[#allocation1 + $0x18] sm:$0xff pattern:$0x73625140] }
  0x34   :  { %v425_v38 = vsel %vm411_vm1, %v398_v23, %v399_v29  ;;  %v344_v44 = vadd.f32 %v280_v34, %v244_v30  ;;  %v102_v45 = vperm.slane %v67_v21, 2  ;;  %v103_v47 = vperm.slane %v67_v21, 3  ;;  %v185_v54 = vld.sshfl [vmem:[#allocation1 + $0x20] sm:$0xff pattern:$0x73625140] }
  0x35   :  { %v426_v43 = vsel %vm413_vm2, %v424_v33, %v425_v38  ;;  %v400_v48 = vrot.slane %v342_v39, 6  ;;  %v401_v49 = vrot.slane %v343_v40, 4  ;;  %v245_v50 = vmul.f32 %v181_v27, %v100_v36  ;;  %v186_v59 = vld.sshfl [vmem:[#allocation1 + $0x28] sm:$0xff pattern:$0x73625140] }
  0x36   :  { %448 = vst [vmem:[#allocation8 + $0x20] sm:$0xff] %v426_v43  ;;  %v246_v46 = vmul.f32 %v182_v32, %v101_v11  ;;  %v402_v51 = vrot.slane %v344_v44, 2  ;;  %v247_v52 = vmul.f32 %v183_v37, %v102_v45  ;;  %v248_v53 = vmul.f32 %v184_v42, %v103_v47  ;;  %v187_v4 = vld.sshfl [vmem:[#allocation1 + $0x30] sm:$0xff pattern:$0x73625140] }
  0x37   :  { %v281_v28 = vperm.slane %v71_v41, 0  ;;  %v427_v55 = vsel %vm409_vm0, %v341_v35, %v400_v48  ;;  %v282_v56 = vperm.slane %v71_v41, 1  ;;  %v283_v57 = vperm.slane %v71_v41, 2  ;;  %v188_v5 = vld.sshfl [vmem:[#allocation1 + $0x38] sm:$0xff pattern:$0x73625140] }
  0x38   :  { %v284_v58 = vperm.slane %v71_v41, 3  ;;  %v428_v60 = vsel %vm411_vm1, %v401_v49, %v402_v51  ;;  %v104_v62 = vperm.slane %v67_v21, 4  ;;  %v105_v63 = vperm.slane %v67_v21, 5 }
  0x39   :  { %v345_v61 = vadd.f32 %v281_v28, %v245_v50  ;;  %v429_v0 = vsel %vm413_vm2, %v427_v55, %v428_v60  ;;  %v346_v1 = vadd.f32 %v282_v56, %v246_v46  ;;  %v347_v2 = vadd.f32 %v283_v57, %v247_v52 }
  0x3a   :  { %v348_v3 = vadd.f32 %v284_v58, %v248_v53  ;;  %449 = vst [vmem:[#allocation8 + $0x28] sm:$0xff] %v429_v0  ;;  %v106_v6 = vperm.slane %v67_v21, 6  ;;  %v107_v7 = vperm.slane %v67_v21, 7  ;;  %v249_v8 = vmul.f32 %v185_v54, %v104_v62 }
  0x3b   :  { %v250_v9 = vmul.f32 %v186_v59, %v105_v63  ;;  %v403_v10 = vrot.slane %v346_v1, 6  ;;  %v404_v12 = vrot.slane %v347_v2, 4  ;;  %v285_v14 = vperm.slane %v71_v41, 4 }
  0x3c   :  { %v405_v13 = vrot.slane %v348_v3, 2  ;;  %v251_v15 = vmul.f32 %v187_v4, %v106_v6  ;;  %v252_v16 = vmul.f32 %v188_v5, %v107_v7  ;;  %v286_v17 = vperm.slane %v71_v41, 5 }
  0x3d   :  { %v287_v18 = vperm.slane %v71_v41, 6  ;;  %v430_v19 = vsel %vm409_vm0, %v345_v61, %v403_v10  ;;  %v288_v25 = vperm.slane %v71_v41, 7  ;;  %v349_v27 = vadd.f32 %v285_v14, %v249_v8 }
  0x3e   :  { %v431_v20 = vsel %vm411_vm1, %v404_v12, %v405_v13  ;;  %v350_v26 = vadd.f32 %v286_v17, %v250_v9 }
  0x3f   :  { %v432_v23 = vsel %vm413_vm2, %v430_v19, %v431_v20  ;;  %v351_v24 = vadd.f32 %v287_v18, %v251_v15  ;;  %v352_v21 = vadd.f32 %v288_v25, %v252_v16 }
  0x40   :  { %450 = vst [vmem:[#allocation8 + $0x30] sm:$0xff] %v432_v23  ;;  %v406_v29 = vrot.slane %v350_v26, 6 }
  0x41   :  { %v407_v30 = vrot.slane %v351_v24, 4  ;;  %v408_v31 = vrot.slane %v352_v21, 2 }
  0x42   :  { %v433_v22 = vsel %vm409_vm0, %v349_v27, %v406_v29 }
  0x43   :  { %v434_v32 = vsel %vm411_vm1, %v407_v30, %v408_v31 }
  0x44   :  { %v435_v33 = vsel %vm413_vm2, %v433_v22, %v434_v32 }
  0x45   :  { %451 = vst [vmem:[#allocation8 + $0x38] sm:$0xff] %v435_v33 }
  0x46   :  { %462 = dma.vmem_to_hbm [thread:$0]  %s458_s2, 1024, %s460_s28, [#allocation4]  }
  0x47   :  { %574 = dma.done.wait [#allocation4], 1024  }
  0x48   :  { %575 = vsyncadd [#allocation4], 4294966272 }
  0x49   :  { %467 = vsyncpa [#allocation3], 1 }
  0x4a   :  { %468 = vsyncpa [#allocation6], 1 }
  0x4b   :  { %469 = vsyncpa [#allocation4], 1 }

</bundles_post_ra>
